<compile_context>
chip_gen: v7x
topology: tpu7x:2x2x1
jax: 0.10.0
libtpu: 0.0.40
codegen_flags: <defaults>
</compile_context>

<pallas_src>
import functools

import jax
import jax.numpy as jnp
from jax import lax
from jax.experimental import pallas as pl
from jax.experimental.pallas import tpu as pltpu

LN_EPS = 1e-5


def _molgnn_kernel(x_ref, a_ref, wi_ref, bi_ref, wg_ref, bg_ref,
                   lng_ref, lnb_ref, pool_ref, wc_ref, bc_ref,
                   logits_ref, logp_ref,
                   *, hidden_true, num_classes_true, num_layers):
    """Whole MolGNN forward in one grid step (grid = ())."""
    a = a_ref[...]                                            # (N, N) bf16

    # --- init linear:  h = x @ W_init^T + b_init  (bf16 x bf16 -> f32) ------
    h = (jnp.dot(x_ref[...], wi_ref[...],
                 preferred_element_type=jnp.float32) + bi_ref[...])

    inv_h = 1.0 / float(hidden_true)

    # --- statically unrolled GCN layer loop (num_layers is tiny & static) ---
    for i in range(num_layers):
        # FLOP-minimal order: A_hat @ (h @ W^T) + b, both matmuls on bf16 MXU.
        hw = jnp.dot(h.astype(jnp.bfloat16), wg_ref[i],
                     preferred_element_type=jnp.float32)
        raw = (jnp.dot(a, hw.astype(jnp.bfloat16),
                       preferred_element_type=jnp.float32) + bg_ref[i])
        if i != num_layers - 1:
            act = jnp.maximum(raw, 0.0)                       # ReLU
            # One-pass LayerNorm over the TRUE hidden width.  Padded feature
            # lanes of `act` are exactly zero so full-lane sums already equal
            # sums over the true hidden dim; gamma/beta are zero on padded
            # lanes so those lanes are zeroed back out after normalization.
            s1 = jnp.sum(act, axis=-1, keepdims=True)
            s2 = jnp.sum(act * act, axis=-1, keepdims=True)
            mean = s1 * inv_h
            var = jnp.maximum(s2 * inv_h - mean * mean, 0.0)  # clamp cancel.
            normed = (act - mean) * lax.rsqrt(var + LN_EPS)
            h = normed * lng_ref[i] + lnb_ref[i]
            # dropout(p=0.0, training=True) is the identity.
        else:
            h = raw

    # --- global_mean_pool + classifier (tiny -> stays f32) ------------------
    pooled = jnp.dot(pool_ref[...], h, preferred_element_type=jnp.float32)
    logits = (jnp.dot(pooled, wc_ref[...],
                      preferred_element_type=jnp.float32) + bc_ref[...])
    logits_ref[...] = logits

    # --- log_softmax over the TRUE classes ----------------------------------
    # Padded class lanes are masked out only inside the max/LSE; the logits
    # output itself carries no sentinel values.
    g_pad, c_pad = logits_ref.shape
    col = lax.broadcasted_iota(jnp.int32, (g_pad, c_pad), 1)
    masked = jnp.where(col < num_classes_true, logits, -1e30)
    m = jnp.max(masked, axis=-1, keepdims=True)
    lse = m + jnp.log(jnp.sum(jnp.exp(masked - m), axis=-1, keepdims=True))
    logp_ref[...] = logits - lse


def molgnn_forward(x_p, a_hat_p, w_init_t_p, b_init_p, w_gcn_t_p, b_gcn_p,
                   ln_gamma_p, ln_beta_p, pool_p, w_cls_t_p, b_cls_p,
                   *, hidden_true, num_classes_true):
    n_pad, d_pad = x_p.shape
    h_pad = w_init_t_p.shape[1]
    g_pad = pool_p.shape[0]
    c_pad = w_cls_t_p.shape[1]
    num_layers = w_gcn_t_p.shape[0]

    inputs = (x_p, a_hat_p, w_init_t_p, b_init_p, w_gcn_t_p, b_gcn_p,
              ln_gamma_p, ln_beta_p, pool_p, w_cls_t_p, b_cls_p)

    # Whole-array VMEM blocks: everything fits comfortably (<0.3 MiB total).
    vmem_spec = pl.BlockSpec(memory_space=pltpu.MemorySpace.VMEM)

    flops = (2 * n_pad * d_pad * h_pad
             + num_layers * (2 * n_pad * h_pad * h_pad
                             + 2 * n_pad * n_pad * h_pad)
             + 2 * g_pad * n_pad * h_pad
             + 2 * g_pad * h_pad * c_pad)
    transcendentals = n_pad * (num_layers - 1) + g_pad * (c_pad + 1)
    bytes_accessed = (sum(int(a.size) * a.dtype.itemsize for a in inputs)
                      + 2 * g_pad * c_pad * 4)

    kernel = functools.partial(_molgnn_kernel,
                               hidden_true=hidden_true,
                               num_classes_true=num_classes_true,
                               num_layers=num_layers)

    return pl.pallas_call(
        kernel,
        out_shape=(jax.ShapeDtypeStruct((g_pad, c_pad), jnp.float32),
                   jax.ShapeDtypeStruct((g_pad, c_pad), jnp.float32)),
        in_specs=[vmem_spec] * len(inputs),
        out_specs=(vmem_spec, vmem_spec),
        compiler_params=pltpu.CompilerParams(
            vmem_limit_bytes=32 * 1024 * 1024),
        cost_estimate=pl.CostEstimate(flops=flops,
                                      transcendentals=transcendentals,
                                      bytes_accessed=bytes_accessed),
    )(*inputs)


if __name__ == "__main__":
    # --- true (unpadded) problem sizes --------------------------------------
    INPUT_DIM = 8
    HIDDEN_DIM = 32
    NUM_CLASSES = 4
    NODES_PER_GRAPH = 8
    NUM_GRAPHS = 2
    NUM_LAYERS = 3
    N = NODES_PER_GRAPH * NUM_GRAPHS            # 16 real nodes

    # --- padded sizes: rows to 8/16-multiple (N stays 16), lanes to 128 -----
    N_PAD, D_PAD, H_PAD, C_PAD, G_PAD = 16, 128, 128, 128, 8

    key = jax.random.PRNGKey(0)
    keys = jax.random.split(key, 8)

    # node features
    x = jax.random.normal(keys[0], (N, INPUT_DIM), dtype=jnp.float32)

    # ring graph inside each of the two graphs (undirected -> both directions)
    src, dst = [], []
    for g in range(NUM_GRAPHS):
        base = g * NODES_PER_GRAPH
        for v in range(NODES_PER_GRAPH):
            u, w = base + v, base + (v + 1) % NODES_PER_GRAPH
            src += [u, w]
            dst += [w, u]
    edge_index = jnp.array([src, dst], dtype=jnp.int32)                 # [2, E]
    batch = jnp.repeat(jnp.arange(NUM_GRAPHS, dtype=jnp.int32),
                       NODES_PER_GRAPH)                                 # [N]

    # ---- plain-JAX glue: dense sym-normalized adjacency & pooling matrix ---
    A = jnp.zeros((N, N), jnp.float32).at[edge_index[1], edge_index[0]].set(1.0)
    A_hat = A + jnp.eye(N, dtype=jnp.float32)                           # + self loops
    deg = jnp.sum(A_hat, axis=1)
    dinv = lax.rsqrt(deg)
    A_norm = dinv[:, None] * A_hat * dinv[None, :]                      # [N, N]

    counts = jnp.bincount(batch, length=NUM_GRAPHS).astype(jnp.float32)
    pool = ((jnp.arange(NUM_GRAPHS)[:, None] == batch[None, :])
            .astype(jnp.float32)) / counts[:, None]                     # [G, N]

    # ---- deterministic parameters (shapes match nn.Module, pre-transposed) -
    scale = 0.1
    w_init_t = scale * jax.random.normal(keys[1], (INPUT_DIM, HIDDEN_DIM),
                                         dtype=jnp.float32)
    b_init = scale * jax.random.normal(keys[2], (1, HIDDEN_DIM),
                                       dtype=jnp.float32)
    w_gcn_t = scale * jax.random.normal(keys[3],
                                        (NUM_LAYERS, HIDDEN_DIM, HIDDEN_DIM),
                                        dtype=jnp.float32)
    b_gcn = scale * jax.random.normal(keys[4], (NUM_LAYERS, 1, HIDDEN_DIM),
                                      dtype=jnp.float32)
    ln_gamma = jnp.ones((NUM_LAYERS - 1, 1, HIDDEN_DIM), jnp.float32)
    ln_beta = jnp.zeros((NUM_LAYERS - 1, 1, HIDDEN_DIM), jnp.float32)
    w_cls_t = scale * jax.random.normal(keys[5], (HIDDEN_DIM, NUM_CLASSES),
                                        dtype=jnp.float32)
    b_cls = scale * jax.random.normal(keys[6], (1, NUM_CLASSES),
                                      dtype=jnp.float32)

    # ---- host-side lane-dense zero padding + bf16 casts for MXU operands ---
    def pad_to(a, shape):
        return jnp.pad(a, [(0, t - s) for s, t in zip(a.shape, shape)])

    x_p = pad_to(x, (N_PAD, D_PAD)).astype(jnp.bfloat16)
    a_hat_p = pad_to(A_norm, (N_PAD, N_PAD)).astype(jnp.bfloat16)
    w_init_t_p = pad_to(w_init_t, (D_PAD, H_PAD)).astype(jnp.bfloat16)
    b_init_p = pad_to(b_init, (1, H_PAD))
    w_gcn_t_p = pad_to(w_gcn_t, (NUM_LAYERS, H_PAD, H_PAD)).astype(jnp.bfloat16)
    b_gcn_p = pad_to(b_gcn, (NUM_LAYERS, 1, H_PAD))
    # LN params: zero on padded feature lanes (gamma=0 zeroes them out after
    # normalization).
    ln_gamma_p = pad_to(ln_gamma, (NUM_LAYERS - 1, 1, H_PAD))
    ln_beta_p = pad_to(ln_beta, (NUM_LAYERS - 1, 1, H_PAD))
    pool_p = pad_to(pool, (G_PAD, N_PAD))
    w_cls_t_p = pad_to(w_cls_t, (H_PAD, C_PAD))
    b_cls_p = pad_to(b_cls, (1, C_PAD))        # plain zero pad (mask is in-kernel)

    logits_pad, logp_pad = molgnn_forward(
        x_p, a_hat_p, w_init_t_p, b_init_p, w_gcn_t_p, b_gcn_p,
        ln_gamma_p, ln_beta_p, pool_p, w_cls_t_p, b_cls_p,
        hidden_true=HIDDEN_DIM, num_classes_true=NUM_CLASSES)
    jax.block_until_ready((logits_pad, logp_pad))

    embedding = logits_pad[:NUM_GRAPHS, :NUM_CLASSES]
    log_probs = logp_pad[:NUM_GRAPHS, :NUM_CLASSES]

    # ---- pure-JAX fp32 reference (exact module semantics, unpadded) --------
    def reference(xr, ar, wir, bir, wgr, bgr, gr, br, pr, wcr, bcr):
        h = xr @ wir + bir
        L = wgr.shape[0]
        for i in range(L):
            h = ar @ (h @ wgr[i]) + bgr[i]
            if i != L - 1:
                h = jnp.maximum(h, 0.0)
                mean = jnp.mean(h, axis=-1, keepdims=True)
                var = jnp.mean((h - mean) ** 2, axis=-1, keepdims=True)
                h = (h - mean) * lax.rsqrt(var + LN_EPS)
                h = h * gr[i] + br[i]
        pooled = pr @ h
        logits = pooled @ wcr + bcr
        return logits, jax.nn.log_softmax(logits, axis=-1)

    ref_logits, ref_logp = reference(x, A_norm, w_init_t, b_init, w_gcn_t,
                                     b_gcn, ln_gamma, ln_beta, pool,
                                     w_cls_t, b_cls)

    assert embedding.shape == (NUM_GRAPHS, NUM_CLASSES)
    assert log_probs.shape == (NUM_GRAPHS, NUM_CLASSES)
    assert bool(jnp.all(jnp.isfinite(embedding)))
    assert bool(jnp.all(jnp.isfinite(log_probs)))
    # log_softmax rows must sum to 1 in prob space (padded classes carry 0 mass)
    assert bool(jnp.allclose(jnp.sum(jnp.exp(log_probs), axis=1), 1.0,
                             atol=1e-5))
    # bf16 matmul operands (x, W_init, W_gcn, A_hat, h) + LayerNorm error
    # amplification -> loose-but-meaningful tolerance vs the fp32 reference.
    assert bool(jnp.allclose(embedding, ref_logits, atol=5e-2))
    assert bool(jnp.allclose(log_probs, ref_logp, atol=5e-2))
    print("KERNEL_OK")
</pallas_src>

<mosaic_0001>
module attributes {stable_mosaic.version = 11 : i64} {
  func.func @_molgnn_kernel(%arg0: memref<16x128xbf16, #tpu.memory_space<vmem>>, %arg1: memref<16x16xbf16, #tpu.memory_space<vmem>>, %arg2: memref<128x128xbf16, #tpu.memory_space<vmem>>, %arg3: memref<1x128xf32, #tpu.memory_space<vmem>>, %arg4: memref<3x128x128xbf16, #tpu.memory_space<vmem>>, %arg5: memref<3x1x128xf32, #tpu.memory_space<vmem>>, %arg6: memref<2x1x128xf32, #tpu.memory_space<vmem>>, %arg7: memref<2x1x128xf32, #tpu.memory_space<vmem>>, %arg8: memref<8x16xf32, #tpu.memory_space<vmem>>, %arg9: memref<128x128xf32, #tpu.memory_space<vmem>>, %arg10: memref<1x128xf32, #tpu.memory_space<vmem>>, %arg11: memref<8x128xf32, #tpu.memory_space<vmem>>, %arg12: memref<8x128xf32, #tpu.memory_space<vmem>>) attributes {dimension_semantics = [], scalar_prefetch = 0 : i64, scratch_operands = 0 : i64, tpu.core_type = #tpu.core_type<tc>} {
    %c0 = arith.constant 0 : index
    %c0_0 = arith.constant 0 : index
    %0 = vector.load %arg1[%c0, %c0_0] : memref<16x16xbf16, #tpu.memory_space<vmem>>, vector<16x16xbf16>
    %c0_1 = arith.constant 0 : index
    %c0_2 = arith.constant 0 : index
    %1 = vector.load %arg0[%c0_1, %c0_2] : memref<16x128xbf16, #tpu.memory_space<vmem>>, vector<16x128xbf16>
    %c0_3 = arith.constant 0 : index
    %c0_4 = arith.constant 0 : index
    %2 = vector.load %arg2[%c0_3, %c0_4] : memref<128x128xbf16, #tpu.memory_space<vmem>>, vector<128x128xbf16>
    %cst = arith.constant dense<0.000000e+00> : vector<16x128xf32>
    %3 = tpu.matmul %1, %2, %cst {dimension_numbers = #tpu.dot_dimension_numbers<[1], [0], [0], [1], [0, 0, 1, 1], [], []>} : vector<16x128xbf16>, vector<128x128xbf16>, vector<16x128xf32> -> vector<16x128xf32>
    %c0_5 = arith.constant 0 : index
    %c0_6 = arith.constant 0 : index
    %4 = vector.load %arg3[%c0_5, %c0_6] : memref<1x128xf32, #tpu.memory_space<vmem>>, vector<1x128xf32>
    %5 = vector.broadcast %4 : vector<1x128xf32> to vector<16x128xf32>
    %6 = arith.addf %3, %5 : vector<16x128xf32>
    %7 = arith.truncf %6 : vector<16x128xf32> to vector<16x128xbf16>
    %c0_7 = arith.constant 0 : index
    %c0_8 = arith.constant 0 : index
    %c0_9 = arith.constant 0 : index
    %8 = vector.load %arg4[%c0_7, %c0_8, %c0_9] : memref<3x128x128xbf16, #tpu.memory_space<vmem>>, vector<1x128x128xbf16>
    %9 = vector.shape_cast %8 : vector<1x128x128xbf16> to vector<128x128xbf16>
    %cst_10 = arith.constant dense<0.000000e+00> : vector<16x128xf32>
    %10 = tpu.matmul %7, %9, %cst_10 {dimension_numbers = #tpu.dot_dimension_numbers<[1], [0], [0], [1], [0, 0, 1, 1], [], []>} : vector<16x128xbf16>, vector<128x128xbf16>, vector<16x128xf32> -> vector<16x128xf32>
    %11 = arith.truncf %10 : vector<16x128xf32> to vector<16x128xbf16>
    %cst_11 = arith.constant dense<0.000000e+00> : vector<16x128xf32>
    %12 = tpu.matmul %0, %11, %cst_11 {dimension_numbers = #tpu.dot_dimension_numbers<[1], [0], [0], [1], [0, 0, 1, 1], [], []>} : vector<16x16xbf16>, vector<16x128xbf16>, vector<16x128xf32> -> vector<16x128xf32>
    %c0_12 = arith.constant 0 : index
    %c0_13 = arith.constant 0 : index
    %c0_14 = arith.constant 0 : index
    %13 = vector.load %arg5[%c0_12, %c0_13, %c0_14] : memref<3x1x128xf32, #tpu.memory_space<vmem>>, vector<1x1x128xf32>
    %14 = vector.shape_cast %13 : vector<1x1x128xf32> to vector<1x128xf32>
    %15 = vector.broadcast %14 : vector<1x128xf32> to vector<16x128xf32>
    %16 = arith.addf %12, %15 : vector<16x128xf32>
    %cst_15 = arith.constant 0.000000e+00 : f32
    %17 = vector.broadcast %cst_15 : f32 to vector<16x128xf32>
    %18 = arith.maximumf %16, %17 : vector<16x128xf32>
    %cst_16 = arith.constant dense<0.000000e+00> : vector<16xf32>
    %19 = vector.multi_reduction <add>, %18, %cst_16 [1] : vector<16x128xf32> to vector<16xf32>
    %20 = vector.shape_cast %19 : vector<16xf32> to vector<16x1xf32>
    %21 = arith.mulf %18, %18 : vector<16x128xf32>
    %cst_17 = arith.constant dense<0.000000e+00> : vector<16xf32>
    %22 = vector.multi_reduction <add>, %21, %cst_17 [1] : vector<16x128xf32> to vector<16xf32>
    %23 = vector.shape_cast %22 : vector<16xf32> to vector<16x1xf32>
    %cst_18 = arith.constant 3.125000e-02 : f32
    %24 = vector.broadcast %cst_18 : f32 to vector<16x1xf32>
    %25 = arith.mulf %20, %24 : vector<16x1xf32>
    %cst_19 = arith.constant 3.125000e-02 : f32
    %26 = vector.broadcast %cst_19 : f32 to vector<16x1xf32>
    %27 = arith.mulf %23, %26 : vector<16x1xf32>
    %28 = arith.mulf %25, %25 : vector<16x1xf32>
    %29 = arith.subf %27, %28 : vector<16x1xf32>
    %cst_20 = arith.constant 0.000000e+00 : f32
    %30 = vector.broadcast %cst_20 : f32 to vector<16x1xf32>
    %31 = arith.maximumf %29, %30 : vector<16x1xf32>
    %32 = vector.broadcast %25 : vector<16x1xf32> to vector<16x128xf32>
    %33 = arith.subf %18, %32 : vector<16x128xf32>
    %cst_21 = arith.constant 9.99999974E-6 : f32
    %34 = vector.broadcast %cst_21 : f32 to vector<16x1xf32>
    %35 = arith.addf %31, %34 : vector<16x1xf32>
    %36 = math.rsqrt %35 : vector<16x1xf32>
    %37 = vector.broadcast %36 : vector<16x1xf32> to vector<16x128xf32>
    %38 = arith.mulf %33, %37 : vector<16x128xf32>
    %c0_22 = arith.constant 0 : index
    %c0_23 = arith.constant 0 : index
    %c0_24 = arith.constant 0 : index
    %39 = vector.load %arg6[%c0_22, %c0_23, %c0_24] : memref<2x1x128xf32, #tpu.memory_space<vmem>>, vector<1x1x128xf32>
    %40 = vector.shape_cast %39 : vector<1x1x128xf32> to vector<1x128xf32>
    %41 = vector.broadcast %40 : vector<1x128xf32> to vector<16x128xf32>
    %42 = arith.mulf %38, %41 : vector<16x128xf32>
    %c0_25 = arith.constant 0 : index
    %c0_26 = arith.constant 0 : index
    %c0_27 = arith.constant 0 : index
    %43 = vector.load %arg7[%c0_25, %c0_26, %c0_27] : memref<2x1x128xf32, #tpu.memory_space<vmem>>, vector<1x1x128xf32>
    %44 = vector.shape_cast %43 : vector<1x1x128xf32> to vector<1x128xf32>
    %45 = vector.broadcast %44 : vector<1x128xf32> to vector<16x128xf32>
    %46 = arith.addf %42, %45 : vector<16x128xf32>
    %47 = arith.truncf %46 : vector<16x128xf32> to vector<16x128xbf16>
    %c1 = arith.constant 1 : index
    %c0_28 = arith.constant 0 : index
    %c0_29 = arith.constant 0 : index
    %48 = vector.load %arg4[%c1, %c0_28, %c0_29] : memref<3x128x128xbf16, #tpu.memory_space<vmem>>, vector<1x128x128xbf16>
    %49 = vector.shape_cast %48 : vector<1x128x128xbf16> to vector<128x128xbf16>
    %cst_30 = arith.constant dense<0.000000e+00> : vector<16x128xf32>
    %50 = tpu.matmul %47, %49, %cst_30 {dimension_numbers = #tpu.dot_dimension_numbers<[1], [0], [0], [1], [0, 0, 1, 1], [], []>} : vector<16x128xbf16>, vector<128x128xbf16>, vector<16x128xf32> -> vector<16x128xf32>
    %51 = arith.truncf %50 : vector<16x128xf32> to vector<16x128xbf16>
    %cst_31 = arith.constant dense<0.000000e+00> : vector<16x128xf32>
    %52 = tpu.matmul %0, %51, %cst_31 {dimension_numbers = #tpu.dot_dimension_numbers<[1], [0], [0], [1], [0, 0, 1, 1], [], []>} : vector<16x16xbf16>, vector<16x128xbf16>, vector<16x128xf32> -> vector<16x128xf32>
    %c1_32 = arith.constant 1 : index
    %c0_33 = arith.constant 0 : index
    %c0_34 = arith.constant 0 : index
    %53 = vector.load %arg5[%c1_32, %c0_33, %c0_34] : memref<3x1x128xf32, #tpu.memory_space<vmem>>, vector<1x1x128xf32>
    %54 = vector.shape_cast %53 : vector<1x1x128xf32> to vector<1x128xf32>
    %55 = vector.broadcast %54 : vector<1x128xf32> to vector<16x128xf32>
    %56 = arith.addf %52, %55 : vector<16x128xf32>
    %cst_35 = arith.constant 0.000000e+00 : f32
    %57 = vector.broadcast %cst_35 : f32 to vector<16x128xf32>
    %58 = arith.maximumf %56, %57 : vector<16x128xf32>
    %cst_36 = arith.constant dense<0.000000e+00> : vector<16xf32>
    %59 = vector.multi_reduction <add>, %58, %cst_36 [1] : vector<16x128xf32> to vector<16xf32>
    %60 = vector.shape_cast %59 : vector<16xf32> to vector<16x1xf32>
    %61 = arith.mulf %58, %58 : vector<16x128xf32>
    %cst_37 = arith.constant dense<0.000000e+00> : vector<16xf32>
    %62 = vector.multi_reduction <add>, %61, %cst_37 [1] : vector<16x128xf32> to vector<16xf32>
    %63 = vector.shape_cast %62 : vector<16xf32> to vector<16x1xf32>
    %cst_38 = arith.constant 3.125000e-02 : f32
    %64 = vector.broadcast %cst_38 : f32 to vector<16x1xf32>
    %65 = arith.mulf %60, %64 : vector<16x1xf32>
    %cst_39 = arith.constant 3.125000e-02 : f32
    %66 = vector.broadcast %cst_39 : f32 to vector<16x1xf32>
    %67 = arith.mulf %63, %66 : vector<16x1xf32>
    %68 = arith.mulf %65, %65 : vector<16x1xf32>
    %69 = arith.subf %67, %68 : vector<16x1xf32>
    %cst_40 = arith.constant 0.000000e+00 : f32
    %70 = vector.broadcast %cst_40 : f32 to vector<16x1xf32>
    %71 = arith.maximumf %69, %70 : vector<16x1xf32>
    %72 = vector.broadcast %65 : vector<16x1xf32> to vector<16x128xf32>
    %73 = arith.subf %58, %72 : vector<16x128xf32>
    %cst_41 = arith.constant 9.99999974E-6 : f32
    %74 = vector.broadcast %cst_41 : f32 to vector<16x1xf32>
    %75 = arith.addf %71, %74 : vector<16x1xf32>
    %76 = math.rsqrt %75 : vector<16x1xf32>
    %77 = vector.broadcast %76 : vector<16x1xf32> to vector<16x128xf32>
    %78 = arith.mulf %73, %77 : vector<16x128xf32>
    %c1_42 = arith.constant 1 : index
    %c0_43 = arith.constant 0 : index
    %c0_44 = arith.constant 0 : index
    %79 = vector.load %arg6[%c1_42, %c0_43, %c0_44] : memref<2x1x128xf32, #tpu.memory_space<vmem>>, vector<1x1x128xf32>
    %80 = vector.shape_cast %79 : vector<1x1x128xf32> to vector<1x128xf32>
    %81 = vector.broadcast %80 : vector<1x128xf32> to vector<16x128xf32>
    %82 = arith.mulf %78, %81 : vector<16x128xf32>
    %c1_45 = arith.constant 1 : index
    %c0_46 = arith.constant 0 : index
    %c0_47 = arith.constant 0 : index
    %83 = vector.load %arg7[%c1_45, %c0_46, %c0_47] : memref<2x1x128xf32, #tpu.memory_space<vmem>>, vector<1x1x128xf32>
    %84 = vector.shape_cast %83 : vector<1x1x128xf32> to vector<1x128xf32>
    %85 = vector.broadcast %84 : vector<1x128xf32> to vector<16x128xf32>
    %86 = arith.addf %82, %85 : vector<16x128xf32>
    %87 = arith.truncf %86 : vector<16x128xf32> to vector<16x128xbf16>
    %c2 = arith.constant 2 : index
    %c0_48 = arith.constant 0 : index
    %c0_49 = arith.constant 0 : index
    %88 = vector.load %arg4[%c2, %c0_48, %c0_49] : memref<3x128x128xbf16, #tpu.memory_space<vmem>>, vector<1x128x128xbf16>
    %89 = vector.shape_cast %88 : vector<1x128x128xbf16> to vector<128x128xbf16>
    %cst_50 = arith.constant dense<0.000000e+00> : vector<16x128xf32>
    %90 = tpu.matmul %87, %89, %cst_50 {dimension_numbers = #tpu.dot_dimension_numbers<[1], [0], [0], [1], [0, 0, 1, 1], [], []>} : vector<16x128xbf16>, vector<128x128xbf16>, vector<16x128xf32> -> vector<16x128xf32>
    %91 = arith.truncf %90 : vector<16x128xf32> to vector<16x128xbf16>
    %cst_51 = arith.constant dense<0.000000e+00> : vector<16x128xf32>
    %92 = tpu.matmul %0, %91, %cst_51 {dimension_numbers = #tpu.dot_dimension_numbers<[1], [0], [0], [1], [0, 0, 1, 1], [], []>} : vector<16x16xbf16>, vector<16x128xbf16>, vector<16x128xf32> -> vector<16x128xf32>
    %c2_52 = arith.constant 2 : index
    %c0_53 = arith.constant 0 : index
    %c0_54 = arith.constant 0 : index
    %93 = vector.load %arg5[%c2_52, %c0_53, %c0_54] : memref<3x1x128xf32, #tpu.memory_space<vmem>>, vector<1x1x128xf32>
    %94 = vector.shape_cast %93 : vector<1x1x128xf32> to vector<1x128xf32>
    %95 = vector.broadcast %94 : vector<1x128xf32> to vector<16x128xf32>
    %96 = arith.addf %92, %95 : vector<16x128xf32>
    %c0_55 = arith.constant 0 : index
    %c0_56 = arith.constant 0 : index
    %97 = vector.load %arg8[%c0_55, %c0_56] : memref<8x16xf32, #tpu.memory_space<vmem>>, vector<8x16xf32>
    %cst_57 = arith.constant dense<0.000000e+00> : vector<8x128xf32>
    %98 = tpu.matmul %97, %96, %cst_57 {dimension_numbers = #tpu.dot_dimension_numbers<[1], [0], [0], [1], [0, 0, 1, 1], [], []>} : vector<8x16xf32>, vector<16x128xf32>, vector<8x128xf32> -> vector<8x128xf32>
    %c0_58 = arith.constant 0 : index
    %c0_59 = arith.constant 0 : index
    %99 = vector.load %arg9[%c0_58, %c0_59] : memref<128x128xf32, #tpu.memory_space<vmem>>, vector<128x128xf32>
    %cst_60 = arith.constant dense<0.000000e+00> : vector<8x128xf32>
    %100 = tpu.matmul %98, %99, %cst_60 {dimension_numbers = #tpu.dot_dimension_numbers<[1], [0], [0], [1], [0, 0, 1, 1], [], []>} : vector<8x128xf32>, vector<128x128xf32>, vector<8x128xf32> -> vector<8x128xf32>
    %c0_61 = arith.constant 0 : index
    %c0_62 = arith.constant 0 : index
    %101 = vector.load %arg10[%c0_61, %c0_62] : memref<1x128xf32, #tpu.memory_space<vmem>>, vector<1x128xf32>
    %102 = vector.broadcast %101 : vector<1x128xf32> to vector<8x128xf32>
    %103 = arith.addf %100, %102 : vector<8x128xf32>
    %c0_63 = arith.constant 0 : index
    %c0_64 = arith.constant 0 : index
    %104 = vector.load %arg11[%c0_63, %c0_64] : memref<8x128xf32, #tpu.memory_space<vmem>>, vector<8x128xf32>
    tpu.vector_store %arg11[%c0_63, %c0_64], %103 {strides = array<i32>} : memref<8x128xf32, #tpu.memory_space<vmem>>, vector<8x128xf32>,
    %105 = tpu.iota {dimensions = array<i32: 1>} : vector<8x128xi32>
    %c4_i32 = arith.constant 4 : i32
    %106 = vector.broadcast %c4_i32 : i32 to vector<8x128xi32>
    %107 = arith.cmpi slt, %105, %106 : vector<8x128xi32>
    %cst_65 = arith.constant -1.000000e+30 : f32
    %108 = vector.broadcast %cst_65 : f32 to vector<8x128xf32>
    %109 = arith.select %107, %103, %108 : vector<8x128xi1>, vector<8x128xf32>
    %cst_66 = arith.constant dense<0xFF800000> : vector<8xf32>
    %110 = vector.multi_reduction <maximumf>, %109, %cst_66 [1] : vector<8x128xf32> to vector<8xf32>
    %111 = vector.shape_cast %110 : vector<8xf32> to vector<8x1xf32>
    %112 = vector.broadcast %111 : vector<8x1xf32> to vector<8x128xf32>
    %113 = arith.subf %109, %112 : vector<8x128xf32>
    %114 = math.exp %113 : vector<8x128xf32>
    %cst_67 = arith.constant dense<0.000000e+00> : vector<8xf32>
    %115 = vector.multi_reduction <add>, %114, %cst_67 [1] : vector<8x128xf32> to vector<8xf32>
    %116 = vector.shape_cast %115 : vector<8xf32> to vector<8x1xf32>
    %117 = math.log %116 : vector<8x1xf32>
    %118 = arith.addf %111, %117 : vector<8x1xf32>
    %119 = vector.broadcast %118 : vector<8x1xf32> to vector<8x128xf32>
    %120 = arith.subf %103, %119 : vector<8x128xf32>
    %c0_68 = arith.constant 0 : index
    %c0_69 = arith.constant 0 : index
    %121 = vector.load %arg12[%c0_68, %c0_69] : memref<8x128xf32, #tpu.memory_space<vmem>>, vector<8x128xf32>
    tpu.vector_store %arg12[%c0_68, %c0_69], %120 {strides = array<i32>} : memref<8x128xf32, #tpu.memory_space<vmem>>, vector<8x128xf32>,
    return
  }
}

</mosaic_0001>

<bundles_post_ra>
// kernel: tpu_custom_call.1
= control target key start
LH: loop header
LB: loop body
LE: loop exit
PB: predicated region body
PF: predicated region fallthrough
CT: control target
= control target key end

     0   :  { %18 = vsyncpa [#allocation3], 0  ;;  %s1865_s0 = inlined_call_operand.hbm [shape: bf16[16,128], index: 0, kind: input, shape index: {}]   ;;  %s1866_s1 = inlined_call_operand.hbm [shape: bf16[16,16], index: 1, kind: input, shape index: {}]   ;;  %s1867_s2 = inlined_call_operand.hbm [shape: bf16[128,128], index: 2, kind: input, shape index: {}]   ;;  %s1868_s3 = inlined_call_operand.hbm [shape: f32[1,128], index: 3, kind: input, shape index: {}]   ;;  %s1869_s4 = inlined_call_operand.hbm [shape: bf16[3,128,128], index: 4, kind: input, shape index: {}]   ;;  %s1870_s5 = inlined_call_operand.vmem [shape: f32[3,1,128], index: 5, kind: input, shape index: {}]   ;;  %s1871_s6 = inlined_call_operand.vmem [shape: f32[2,1,128], index: 6, kind: input, shape index: {}]   ;;  %s1872_s7 = inlined_call_operand.vmem [shape: f32[2,1,128], index: 7, kind: input, shape index: {}]   ;;  %s1873_s8 = inlined_call_operand.vmem [shape: f32[8,16], index: 8, kind: input, shape index: {}]   ;;  %s1874_s9 = inlined_call_operand.hbm [shape: f32[128,128], index: 9, kind: input, shape index: {}]   ;;  %s1875_s10 = inlined_call_operand.vmem [shape: f32[1,128], index: 10, kind: input, shape index: {}]   ;;  %s1876_s11 = inlined_call_operand.hbm [shape: f32[8,128], index: 11, kind: output, shape index: {0}]   ;;  %s1877_s12 = inlined_call_operand.hbm [shape: f32[8,128], index: 12, kind: output, shape index: {1}]  }
   0x1   :  { %19 = vsyncpa [#allocation6], 0 }
   0x2   :  { %20 = vsyncpa [#allocation9], 0 }
   0x3   :  { %21 = vsyncpa [#allocation12], 0 }
   0x4   :  { %22 = vsyncpa [#allocation4], 0 }
   0x5   :  { %23 = vsyncpa [#allocation15], 0  ;;  %s1566_s21 = smov [#allocation5]   ;;  %s1567_s23 = smov [#allocation8]  }
   0x6   :  { %s41_s22 = sshll.u32 %s1566_s21, 4  ;;  %s66_s24 = sshll.u32 %s1567_s23, 4  ;;  %s42_s22 = int_to_ptr.vmem [resolvable:$true] %s41_s22  ;;  %s1646_s24 = int_to_ptr.vmem [resolvable:$true] %s66_s24 }
   0x7   :  { %s1378_s27 = scalar_lea.hbm %s1866_s1, 128 }
   0x8   :  { %p1379_p0 = scmp.ne.s32.totalorder %s1866_s1, %s1378_s27  ;;  %p1382_p1 = scmp.lt.u32.totalorder %s1378_s27, %s1866_s1 }
   0xa   :  { %p1384_p2 = pnand %p1382_p1, %p1379_p0 }
   0xc   :  { %1387 = shalt.err (!%p1384_p2)
}
   0xd   :  { %s1388_s14 = scalar_lea.vmem %s42_s22, 128  ;;  %p1393_p4 = scmp.lt.s32.totalorder %s42_s22, %s42_s22 }
   0xe   :  { %p1389_p3 = scmp.ne.s32.totalorder %s42_s22, %s1388_s14  ;;  %p1394_p5 = scmp.lt.s32.totalorder %s1388_s14, %s1388_s14 }
  0x10   :  { %p1395_p6 = por %p1394_p5, %p1393_p4 }
  0x12   :  { %p1396_p7 = pnand %p1395_p6, %p1389_p3 }
  0x14   :  { %1399 = shalt.err (!%p1396_p7)
}
  0x15   :  { %s1568_s15 = smov 64   ;;  %s1569_s16 = smov 4  }
  0x16   :  { %47 = dma.hbm_to_vmem [thread:$0]  %s1866_s1, 128, %s42_s22, [#allocation6], %s1568_s15, %s1568_s15, %s1569_s16  }
  0x17   :  { %s1400_s21 = scalar_lea.hbm %s1868_s3, 16 }
  0x18   :  { %p1401_p8 = scmp.ne.s32.totalorder %s1868_s3, %s1400_s21  ;;  %p1404_p9 = scmp.lt.u32.totalorder %s1400_s21, %s1868_s3 }
  0x1a   :  { %p1406_p10 = pnand %p1404_p9, %p1401_p8 }
  0x1c   :  { %1409 = shalt.err (!%p1406_p10)
}
  0x1d   :  { %s1410_s28 = scalar_lea.vmem %s1646_s24, 16  ;;  %s1414_s1 = scalar_lea.vmem %s1646_s24, 32 }
  0x1e   :  { %p1411_p11 = scmp.ne.s32.totalorder %s1646_s24, %s1410_s28  ;;  %p1415_p12 = scmp.lt.s32.totalorder %s1646_s24, %s1646_s24 }
  0x1f   :  { %p1416_p13 = scmp.lt.s32.totalorder %s1414_s1, %s1410_s28 }
  0x21   :  { %p1417_p0 = por %p1416_p13, %p1415_p12 }
  0x23   :  { %p1418_p1 = pnand %p1417_p0, %p1411_p11 }
  0x25   :  { %1421 = shalt.err (!%p1418_p1)
}
  0x26   :  { %69 = dma.hbm_to_vmem [thread:$0]  %s1868_s3, 16, %s1646_s24, [#allocation9]  }
  0x27   :  { %s1570_s30 = smov [#allocation2]   ;;  %s1571_s14 = smov [#allocation7]  }
  0x28   :  { %s29_s13 = sshll.u32 %s1570_s30, 4  ;;  %s53_s17 = sshll.u32 %s1571_s14, 4  ;;  %s30_s13 = int_to_ptr.vmem [resolvable:$true] %s29_s13  ;;  %s1681_s17 = int_to_ptr.vmem [resolvable:$true] %s53_s17 }
  0x29   :  { %s1422_s20 = scalar_lea.hbm %s1865_s0, 128 }
  0x2a   :  { %p1423_p2 = scmp.ne.s32.totalorder %s1865_s0, %s1422_s20  ;;  %p1426_p3 = scmp.lt.u32.totalorder %s1422_s20, %s1865_s0 }
  0x2c   :  { %p1428_p4 = pnand %p1426_p3, %p1423_p2 }
  0x2e   :  { %1431 = shalt.err (!%p1428_p4)
}
  0x2f   :  { %s1432_s3 = scalar_lea.vmem %s30_s13, 128  ;;  %p1437_p6 = scmp.lt.s32.totalorder %s30_s13, %s30_s13 }
  0x30   :  { %p1433_p5 = scmp.ne.s32.totalorder %s30_s13, %s1432_s3  ;;  %p1438_p7 = scmp.lt.s32.totalorder %s1432_s3, %s1432_s3 }
  0x32   :  { %p1439_p8 = por %p1438_p7, %p1437_p6 }
  0x34   :  { %p1440_p9 = pnand %p1439_p8, %p1433_p5 }
  0x36   :  { %1443 = shalt.err (!%p1440_p9)
}
  0x37   :  { %35 = dma.hbm_to_vmem [thread:$0]  %s1865_s0, 128, %s30_s13, [#allocation3], %s1568_s15, %s1568_s15, %s1569_s16  }
  0x38   :  { %s1444_s22 = scalar_lea.hbm %s1867_s2, 1024 }
  0x39   :  { %p1445_p10 = scmp.ne.s32.totalorder %s1867_s2, %s1444_s22  ;;  %p1448_p11 = scmp.lt.u32.totalorder %s1444_s22, %s1867_s2 }
  0x3b   :  { %p1450_p12 = pnand %p1448_p11, %p1445_p10 }
  0x3d   :  { %1453 = shalt.err (!%p1450_p12)
}
  0x3e   :  { %s1454_s19 = scalar_lea.vmem %s1681_s17, 1024  ;;  %p1459_p0 = scmp.lt.s32.totalorder %s1681_s17, %s1681_s17 }
  0x3f   :  { %p1455_p13 = scmp.ne.s32.totalorder %s1681_s17, %s1454_s19  ;;  %p1460_p1 = scmp.lt.s32.totalorder %s1454_s19, %s1454_s19 }
  0x41   :  { %p1461_p2 = por %p1460_p1, %p1459_p0 }
  0x43   :  { %p1462_p3 = pnand %p1461_p2, %p1455_p13 }
  0x45   :  { %1465 = shalt.err (!%p1462_p3)
}
  0x46   :  { %59 = dma.hbm_to_vmem [thread:$0]  %s1867_s2, 1024, %s1681_s17, [#allocation6], %s1568_s15, %s1568_s15, %s1569_s16  }
  0x47   :  { %s1572_s20 = smov [#allocation10]   ;;  %s1573_s23 = smov [#allocation11]  }
  0x48   :  { %s75_s21 = sshll.u32 %s1572_s20, 4  ;;  %s95_s25 = sshll.u32 %s1573_s23, 4  ;;  %s76_s21 = int_to_ptr.vmem [resolvable:$true] %s75_s21  ;;  %s1718_s25 = int_to_ptr.vmem [resolvable:$true] %s95_s25 }
  0x49   :  { %s1466_s24 = scalar_lea.hbm %s1869_s4, 3072 }
  0x4a   :  { %p1467_p4 = scmp.ne.s32.totalorder %s1869_s4, %s1466_s24  ;;  %p1470_p5 = scmp.lt.u32.totalorder %s1466_s24, %s1869_s4 }
  0x4c   :  { %p1472_p6 = pnand %p1470_p5, %p1467_p4 }
  0x4e   :  { %1475 = shalt.err (!%p1472_p6)
}
  0x4f   :  { %s1476_s2 = scalar_lea.vmem %s76_s21, 3072  ;;  %p1481_p8 = scmp.lt.s32.totalorder %s76_s21, %s76_s21 }
  0x50   :  { %p1477_p7 = scmp.ne.s32.totalorder %s76_s21, %s1476_s2  ;;  %p1482_p9 = scmp.lt.s32.totalorder %s1476_s2, %s1476_s2 }
  0x52   :  { %p1483_p10 = por %p1482_p9, %p1481_p8 }
  0x54   :  { %p1484_p11 = pnand %p1483_p10, %p1477_p7 }
  0x56   :  { %1487 = shalt.err (!%p1484_p11)
}
  0x57   :  { %81 = dma.hbm_to_vmem [thread:$0]  %s1869_s4, 3072, %s76_s21, [#allocation9], %s1568_s15, %s1568_s15, %s1569_s16  }
  0x58   :  { %s1488_s18 = scalar_lea.hbm %s1874_s9, 2048 }
  0x59   :  { %p1489_p12 = scmp.ne.s32.totalorder %s1874_s9, %s1488_s18  ;;  %p1492_p13 = scmp.lt.u32.totalorder %s1488_s18, %s1874_s9 }
  0x5b   :  { %p1494_p0 = pnand %p1492_p13, %p1489_p12 }
  0x5d   :  { %1497 = shalt.err (!%p1494_p0)
}
  0x5e   :  { %s1498_s23 = scalar_lea.vmem %s1718_s25, 2048  ;;  %p1503_p2 = scmp.lt.s32.totalorder %s1718_s25, %s1718_s25 }
  0x5f   :  { %p1499_p1 = scmp.ne.s32.totalorder %s1718_s25, %s1498_s23  ;;  %p1504_p3 = scmp.lt.s32.totalorder %s1498_s23, %s1498_s23 }
  0x61   :  { %p1505_p4 = por %p1504_p3, %p1503_p2 }
  0x63   :  { %p1506_p5 = pnand %p1505_p4, %p1499_p1 }
  0x65   :  { %1509 = shalt.err (!%p1506_p5)
}
  0x66   :  { %s1574_s4 = smov 128   ;;  %s1575_s15 = smov 8  }
  0x67   :  { %101 = dma.hbm_to_vmem [thread:$0]  %s1874_s9, 2048, %s1718_s25, [#allocation12], %s1574_s4, %s1574_s4, %s1575_s15  }
  0x68   :  { %1554 = dma.done.wait [#allocation3], 128  }
  0x69   :  { %1555 = vsyncadd [#allocation3], 4294967168 }
  0x6a   :  { %1556 = dma.done.wait [#allocation6], 1152  }
  0x6b   :  { %1557 = vsyncadd [#allocation6], 4294966144 }
  0x6c   :  { %1558 = dma.done.wait [#allocation9], 3088  }
  0x6d   :  { %1559 = vsyncadd [#allocation9], 4294964208 }
  0x6e   :  { %1560 = dma.done.wait [#allocation12], 2048  }
  0x6f   :  { %1561 = vsyncadd [#allocation12], 4294965248  ;;  %v1576_v0 = vmov 0.0   ;;  %vm1577_vm0 = vmmov 0   ;;  %v1332_v1 = vld [vmem:[#allocation7] sm:$0xff]   ;;  %v1333_v2 = vld [vmem:[#allocation7 + $0x8] sm:$0xff]  }
  0x70   :  { %1150 = vmatprep.subr.bf16.mxu0 %v1576_v0  ;;  %1166 = vmatprep.mubr.msk.bf16.mxu0 %vm1577_vm0, %v1576_v0  ;;  %v1334_v3 = vld [vmem:[#allocation7 + $0x10] sm:$0xff]   ;;  %v1341_v4 = vld [vmem:[#allocation10] sm:$0xff]   ;;  %v1335_v5 = vld [vmem:[#allocation7 + $0x18] sm:$0xff]   ;;  %vm364_vm1 = vcmask 130048  }
  0x71   :  { %1170 = vmatprep.subr.bf16.mxu1 %v1576_v0  ;;  %1186 = vmatprep.mubr.msk.bf16.mxu1 %vm1577_vm0, %v1576_v0  ;;  %v1342_v6 = vld [vmem:[#allocation10 + $0x8] sm:$0xff]   ;;  %v1336_v7 = vld [vmem:[#allocation7 + $0x20] sm:$0xff]   ;;  %v1343_v8 = vld [vmem:[#allocation10 + $0x10] sm:$0xff]  }
  0x72   :  { %1151 = vmatpush3.bf16.msra.mxu0 %v1332_v1  ;;  %1171 = vmatpush3.bf16.msra.mxu1 %v1341_v4  ;;  %v1337_v9 = vld [vmem:[#allocation7 + $0x28] sm:$0xff]   ;;  %v1344_v10 = vld [vmem:[#allocation10 + $0x18] sm:$0xff]   ;;  %v1338_v11 = vld [vmem:[#allocation7 + $0x30] sm:$0xff]  }
  0x73   :  { %1152 = vmatprep.subr.bf16.mxu0 %v1576_v0  ;;  %1172 = vmatprep.subr.bf16.mxu1 %v1576_v0  ;;  %v1345_v12 = vld [vmem:[#allocation10 + $0x20] sm:$0xff]   ;;  %v1339_v13 = vld [vmem:[#allocation7 + $0x38] sm:$0xff]   ;;  %v1346_v14 = vld [vmem:[#allocation10 + $0x28] sm:$0xff]  }
  0x74   :  { %v1340_v15 = vld [vmem:[#allocation2] sm:$0xff]   ;;  %v1348_v17 = vld [vmem:[#allocation10 + $0x38] sm:$0xff]   ;;  %v1350_v43 = vld [vmem:[#allocation10 + $0x40] sm:$0xff]  }
  0x75   :  { %v1347_v16 = vld [vmem:[#allocation10 + $0x30] sm:$0xff]   ;;  %v1037_v18 = vld [vmem:[#allocation8] ss:$0 sm:$0xff]  ;;  %v1055_v32 = vld [vmem:[%s1870_s5] ss:$0 sm:$0xff] }
  0x76   :  { %1153 = vmatpush3.bf16.msra.mxu0 %v1333_v2  ;;  %1173 = vmatpush3.bf16.msra.mxu1 %v1342_v6  ;;  %v1778_v31 = vld [vmem:[#allocation5] sm:$0xff]   ;;  %v1351_v44 = vld [vmem:[#allocation10 + $0x48] sm:$0xff]   ;;  %v1354_v47 = vld [vmem:[#allocation10 + $0x60] sm:$0xff]  }
  0x77   :  { %1154 = vmatprep.subr.bf16.mxu0 %v1576_v0  ;;  %1174 = vmatprep.subr.bf16.mxu1 %v1576_v0  ;;  %v1352_v45 = vld [vmem:[#allocation10 + $0x50] sm:$0xff]   ;;  %v1353_v46 = vld [vmem:[#allocation10 + $0x58] sm:$0xff]   ;;  %v1355_v48 = vld [vmem:[#allocation10 + $0x68] sm:$0xff]  }
  0x78   :  { %v1356_v49 = vld [vmem:[#allocation10 + $0x70] sm:$0xff]   ;;  %v1357_v50 = vld [vmem:[#allocation10 + $0x78] sm:$0xff]  }
  0x7a   :  { %1155 = vmatpush3.bf16.msra.mxu0 %v1334_v3  ;;  %1175 = vmatpush3.bf16.msra.mxu1 %v1343_v8 }
  0x7b   :  { %1156 = vmatprep.subr.bf16.mxu0 %v1576_v0  ;;  %1176 = vmatprep.subr.bf16.mxu1 %v1576_v0 }
  0x7e   :  { %1157 = vmatpush3.bf16.msra.mxu0 %v1335_v5  ;;  %1177 = vmatpush3.bf16.msra.mxu1 %v1344_v10 }
  0x7f   :  { %1158 = vmatprep.subr.bf16.mxu0 %v1576_v0  ;;  %1178 = vmatprep.subr.bf16.mxu1 %v1576_v0 }
  0x82   :  { %1159 = vmatpush3.bf16.msra.mxu0 %v1336_v7  ;;  %1179 = vmatpush3.bf16.msra.mxu1 %v1345_v12  ;;  %v1058_v7 = vld [vmem:[%s1871_s6] ss:$0 sm:$0xff] }
  0x83   :  { %1160 = vmatprep.subr.bf16.mxu0 %v1576_v0  ;;  %1180 = vmatprep.subr.bf16.mxu1 %v1576_v0  ;;  %v1059_v12 = vld [vmem:[%s1872_s7] ss:$0 sm:$0xff] }
  0x86   :  { %1161 = vmatpush3.bf16.msra.mxu0 %v1337_v9  ;;  %1181 = vmatpush3.bf16.msra.mxu1 %v1346_v14 }
  0x87   :  { %1162 = vmatprep.subr.bf16.mxu0 %v1576_v0  ;;  %1182 = vmatprep.subr.bf16.mxu1 %v1576_v0 }
  0x8a   :  { %1163 = vmatpush3.bf16.msra.mxu0 %v1338_v11  ;;  %1183 = vmatpush3.bf16.msra.mxu1 %v1347_v16 }
  0x8b   :  { %1164 = vmatprep.subr.bf16.mxu0 %v1576_v0  ;;  %1184 = vmatprep.subr.bf16.mxu1 %v1576_v0 }
  0x8e   :  { %1165 = vmatpush3.bf16.msra.mxu0 %v1339_v13  ;;  %1185 = vmatpush3.bf16.msra.mxu1 %v1348_v17 }
  0x8f   :  { %1222 = vmatprep.subr.bf16.mxu0 %v1576_v0  ;;  %1190 = vmatprep.subr.bf16.mxu1 %v1576_v0 }
  0x91   :  { %1167 = vmatmul.mubr.bf16.vlgmr.msra.gmra.mrb[0].mxu0 %v1340_v15 }
  0x92   :  { %1238 = vmatprep.mubr.msk.bf16.mxu0 %vm1577_vm0, %v1576_v0 }
 0x164   :  { %v238_v19 = vpop.f32.mrb[0].mxu0 }
 0x165   :  { %v1168_v20 = vpop.f32.mrb[1].mxu0  ;;  %v239_v22 = vadd.f32 %v1037_v18, %v238_v19 }
 0x166   :  { %v241_v21 = vpop.f32.mrb[2].mxu0 }
 0x167   :  { %v242_v23 = vadd.f32 %v1037_v18, %v241_v21  ;;  %v1169_v24 = vpop.f32.mrb[3].mxu0 }
 0x169   :  { %v245_v25 = vpack.c.bf16 %v242_v23, %v239_v22  ;;  %v1069_v22 = vld [vmem:[%s1870_s5 + $0x1] ss:$0 sm:$0xff] }
 0x16b   :  { %1187 = vmatmul.mubr.bf16.vlgmr.msra.gmra.mrb[0].mxu1 %v245_v25 }
 0x16c   :  { %1192 = vmatprep.mubr.msk.bf16.mxu1 %vm1577_vm0, %v1576_v0 }
 0x23e   :  { %v344_v26 = vpop.f32.mrb[0].mxu1 }
 0x23f   :  { %v1188_v27 = vpop.f32.mrb[1].mxu1 }
 0x240   :  { %v347_v28 = vpop.f32.mrb[2].mxu1 }
 0x241   :  { %v351_v29 = vpack.c.bf16 %v347_v28, %v344_v26  ;;  %v1189_v30 = vpop.f32.mrb[3].mxu1 }
 0x243   :  { %1191 = vmatpush3.bf16.msra.mxu1 %v351_v29 }
 0x244   :  { %1196 = vmatprep.subr.bf16.mxu1 %v1576_v0 }
 0x246   :  { %1193 = vmatmul.mubr.msk.bf16.vlgmr.msra.gmra.mrb[4].mxu1 %vm364_vm1, %v1778_v31 }
 0x247   :  { %1212 = vmatprep.mubr.msk.bf16.mxu1 %vm1577_vm0, %v1576_v0  ;;  %1197 = vmatpush3.bf16.msra.mxu1 %v1350_v43 }
 0x248   :  { %1198 = vmatprep.subr.bf16.mxu1 %v1576_v0 }
 0x24b   :  { %1199 = vmatpush3.bf16.msra.mxu1 %v1351_v44 }
 0x24c   :  { %1200 = vmatprep.subr.bf16.mxu1 %v1576_v0 }
 0x24f   :  { %1201 = vmatpush3.bf16.msra.mxu1 %v1352_v45 }
 0x250   :  { %1202 = vmatprep.subr.bf16.mxu1 %v1576_v0 }
 0x253   :  { %1203 = vmatpush3.bf16.msra.mxu1 %v1353_v46 }
 0x254   :  { %1204 = vmatprep.subr.bf16.mxu1 %v1576_v0 }
 0x257   :  { %1205 = vmatpush3.bf16.msra.mxu1 %v1354_v47 }
 0x258   :  { %1206 = vmatprep.subr.bf16.mxu1 %v1576_v0 }
 0x25b   :  { %1207 = vmatpush3.bf16.msra.mxu1 %v1355_v48 }
 0x25c   :  { %1208 = vmatprep.subr.bf16.mxu1 %v1576_v0 }
 0x25f   :  { %1209 = vmatpush3.bf16.msra.mxu1 %v1356_v49 }
 0x260   :  { %1210 = vmatprep.subr.bf16.mxu1 %v1576_v0 }
 0x263   :  { %1211 = vmatpush3.bf16.msra.mxu1 %v1357_v50 }
 0x264   :  { %1216 = vmatprep.subr.bf16.mxu1 %v1576_v0 }
 0x319   :  { %v402_v33 = vpop.f32.mrb[4].mxu1 }
 0x31a   :  { %v403_v34 = vadd.f32 %v1055_v32, %v402_v33  ;;  %v1194_v35 = vpop.f32.mrb[5].mxu1 }
 0x31b   :  { %v405_v36 = vpop.f32.mrb[6].mxu1  ;;  %v1359_v35 = vld [vmem:[#allocation10 + $0x88] sm:$0xff]  }
 0x31c   :  { %v409_v37 = vmax.f32 %v403_v34, 0.0  ;;  %v406_v38 = vadd.f32 %v1055_v32, %v405_v36  ;;  %v1195_v39 = vpop.f32.mrb[7].mxu1  ;;  %v1358_v34 = vld [vmem:[#allocation10 + $0x80] sm:$0xff]   ;;  %v1360_v36 = vld [vmem:[#allocation10 + $0x90] sm:$0xff]  }
 0x31d   :  { %1223 = vmatpush3.bf16.msra.mxu0 %v1358_v34  ;;  %v1363_v39 = vld [vmem:[#allocation10 + $0xa8] sm:$0xff]   ;;  %v909_v34 = vld [vmem:[#allocation11 + $0x70] sm:$0xff] }
 0x31e   :  { %v410_v40 = vmax.f32 %v406_v38, 0.0  ;;  %411 = vadd.xlane.f32.xlu0 %v409_v37  ;;  %v415_v41 = vmul.f32 %v409_v37, %v409_v37  ;;  %1224 = vmatprep.subr.bf16.mxu0 %v1576_v0  ;;  %v1362_v38 = vld [vmem:[#allocation10 + $0xa0] sm:$0xff]  }
 0x320   :  { %417 = vadd.xlane.f32.xlu1 %v415_v41  ;;  %v416_v42 = vmul.f32 %v410_v40, %v410_v40  ;;  %v1365_v41 = vld [vmem:[#allocation10 + $0xb8] sm:$0xff]  }
 0x321   :  { %1225 = vmatpush3.bf16.msra.mxu0 %v1359_v35  ;;  %v910_v35 = vld [vmem:[#allocation11 + $0x78] sm:$0xff] }
 0x322   :  { %413 = vadd.xlane.f32.xlu0 %v410_v40  ;;  %1226 = vmatprep.subr.bf16.mxu0 %v1576_v0 }
 0x324   :  { %419 = vadd.xlane.f32.xlu1 %v416_v42 }
 0x325   :  { %1227 = vmatpush3.bf16.msra.mxu0 %v1360_v36  ;;  %v1315_v36 = vpack.c.bf16 %v910_v35, %v909_v34 }
 0x326   :  { %1228 = vmatprep.subr.bf16.mxu0 %v1576_v0 }
 0x3ab   :  { %v412_v51 = vpop.xlane.xlu0 %411 }
 0x3ac   :  { %v421_v52 = vmul.f32 0.03125, %v412_v51 }
 0x3ad   :  { %v418_v53 = vpop.xlane.xlu1 %417 }
 0x3ae   :  { %v425_v54 = vmul.f32 %v421_v52, %v421_v52  ;;  %v423_v55 = vmul.f32 0.03125, %v418_v53  ;;  %v431_v4 = vsub.f32 %v409_v37, %v421_v52  ;;  %v1361_v37 = vld [vmem:[#allocation10 + $0x98] sm:$0xff]  }
 0x3af   :  { %v414_v56 = vpop.xlane.xlu0 %413  ;;  %1229 = vmatpush3.bf16.msra.mxu0 %v1361_v37  ;;  %v1084_v37 = vld [vmem:[%s1870_s5 + $0x2] ss:$0 sm:$0xff] }
 0x3b0   :  { %v427_v57 = vsub.f32 %v423_v55, %v425_v54  ;;  %v422_v58 = vmul.f32 0.03125, %v414_v56  ;;  %1230 = vmatprep.subr.bf16.mxu0 %v1576_v0 }
 0x3b1   :  { %v420_v59 = vpop.xlane.xlu1 %419 }
 0x3b2   :  { %v429_v60 = vmax.f32 %v427_v57, 0.0  ;;  %v426_v61 = vmul.f32 %v422_v58, %v422_v58  ;;  %v424_v62 = vmul.f32 0.03125, %v420_v59  ;;  %v432_v8 = vsub.f32 %v410_v40, %v422_v58  ;;  %v1364_v40 = vld [vmem:[#allocation10 + $0xb0] sm:$0xff]  }
 0x3b3   :  { %1231 = vmatpush3.bf16.msra.mxu0 %v1362_v38 }
 0x3b4   :  { %v433_v63 = vadd.f32 1e-05, %v429_v60  ;;  %v428_v1 = vsub.f32 %v424_v62, %v426_v61  ;;  %1232 = vmatprep.subr.bf16.mxu0 %v1576_v0  ;;  %v1072_v60 = vld [vmem:[%s1871_s6 + $0x1] ss:$0 sm:$0xff] }
 0x3b6   :  { %1366 = vrsqrt.f32 %v433_v63  ;;  %v430_v2 = vmax.f32 %v428_v1, 0.0 }
 0x3b7   :  { %1233 = vmatpush3.bf16.msra.mxu0 %v1363_v39 }
 0x3b8   :  { %v434_v3 = vadd.f32 1e-05, %v430_v2  ;;  %1234 = vmatprep.subr.bf16.mxu0 %v1576_v0 }
 0x3ba   :  { %1368 = vrsqrt.f32 %v434_v3  ;;  %v1074_v3 = vld [vmem:[%s1872_s7 + $0x1] ss:$0 sm:$0xff] }
 0x3bb   :  { %1235 = vmatpush3.bf16.msra.mxu0 %v1364_v40 }
 0x3bc   :  { %1236 = vmatprep.subr.bf16.mxu0 %v1576_v0 }
 0x3bf   :  { %1237 = vmatpush3.bf16.msra.mxu0 %v1365_v41 }
 0x3c0   :  { %v1367_v5 = vpop.eup %1366 }
 0x3c1   :  { %v437_v6 = vmul.f32 %v1367_v5, %v431_v4 }
 0x3c3   :  { %v446_v11 = vmul.f32 %v1058_v7, %v437_v6 }
 0x3c4   :  { %v1369_v9 = vpop.eup %1368 }
 0x3c5   :  { %v438_v10 = vmul.f32 %v1369_v9, %v432_v8  ;;  %v455_v14 = vadd.f32 %v1059_v12, %v446_v11 }
 0x3c7   :  { %v447_v13 = vmul.f32 %v1058_v7, %v438_v10 }
 0x3c9   :  { %v456_v15 = vadd.f32 %v1059_v12, %v447_v13  ;;  %v1578_v13 = vmov 0.0|0.0  }
 0x3ca   :  { %1293 = vmatprep.subr.bf16.mxu0 %v1578_v13 }
 0x3cb   :  { %v457_v16 = vpack.c.bf16 %v456_v15, %v455_v14  ;;  %v895_v14 = vld [vmem:[#allocation11] sm:$0xff]  ;;  %v896_v15 = vld [vmem:[#allocation11 + $0x8] sm:$0xff] }
 0x3cd   :  { %1213 = vmatmul.mubr.bf16.vlgmr.msra.gmra.mrb[8].mxu1 %v457_v16  ;;  %v897_v16 = vld [vmem:[#allocation11 + $0x10] sm:$0xff] }
 0x3ce   :  { %1218 = vmatprep.mubr.msk.bf16.mxu1 %vm1577_vm0, %v1576_v0 }
 0x4a0   :  { %v557_v17 = vpop.f32.mrb[8].mxu1 }
 0x4a1   :  { %v1214_v18 = vpop.f32.mrb[9].mxu1 }
 0x4a2   :  { %v560_v19 = vpop.f32.mrb[10].mxu1  ;;  %v898_v18 = vld [vmem:[#allocation11 + $0x18] sm:$0xff] }
 0x4a3   :  { %v564_v20 = vpack.c.bf16 %v560_v19, %v557_v17  ;;  %v1215_v21 = vpop.f32.mrb[11].mxu1  ;;  %v1294_v17 = vpack.c.bf16 %v896_v15, %v895_v14  ;;  %v1297_v19 = vpack.c.bf16 %v898_v18, %v897_v16 }
 0x4a4   :  { %v900_v21 = vld [vmem:[#allocation11 + $0x28] sm:$0xff] }
 0x4a5   :  { %1217 = vmatpush3.bf16.msra.mxu1 %v564_v20  ;;  %v899_v20 = vld [vmem:[#allocation11 + $0x20] sm:$0xff] }
 0x4a6   :  { %1242 = vmatprep.subr.bf16.mxu1 %v1576_v0 }
 0x4a8   :  { %1219 = vmatmul.mubr.msk.bf16.vlgmr.msra.gmra.mrb[12].mxu1 %vm364_vm1, %v1778_v31 }
 0x4a9   :  { %1244 = vmatprep.mubr.msk.bf16.mxu1 %vm1577_vm0, %v1576_v0 }
 0x57b   :  { %v607_v23 = vpop.f32.mrb[12].mxu1 }
 0x57c   :  { %v608_v24 = vadd.f32 %v1069_v22, %v607_v23  ;;  %v1220_v25 = vpop.f32.mrb[13].mxu1  ;;  %v902_v23 = vld [vmem:[#allocation11 + $0x38] sm:$0xff] }
 0x57d   :  { %v610_v26 = vpop.f32.mrb[14].mxu1  ;;  %v904_v25 = vld [vmem:[#allocation11 + $0x48] sm:$0xff] }
 0x57e   :  { %v614_v27 = vmax.f32 %v608_v24, 0.0  ;;  %v611_v28 = vadd.f32 %v1069_v22, %v610_v26  ;;  %v1221_v29 = vpop.f32.mrb[15].mxu1  ;;  %v1300_v22 = vpack.c.bf16 %v900_v21, %v899_v20  ;;  %v903_v24 = vld [vmem:[#allocation11 + $0x40] sm:$0xff] }
 0x57f   :  { %v1306_v26 = vpack.c.bf16 %v904_v25, %v903_v24 }
 0x580   :  { %v615_v30 = vmax.f32 %v611_v28, 0.0  ;;  %616 = vadd.xlane.f32.xlu0 %v614_v27  ;;  %v620_v32 = vmul.f32 %v614_v27, %v614_v27  ;;  %v906_v28 = vld [vmem:[#allocation11 + $0x58] sm:$0xff] }
 0x582   :  { %618 = vadd.xlane.f32.xlu1 %v615_v30  ;;  %v621_v33 = vmul.f32 %v615_v30, %v615_v30 }
 0x584   :  { %622 = vadd.xlane.f32.xlu0 %v620_v32  ;;  %v908_v32 = vld [vmem:[#allocation11 + $0x68] sm:$0xff] }
 0x586   :  { %624 = vadd.xlane.f32.xlu1 %v621_v33 }
 0x60d   :  { %v617_v42 = vpop.xlane.xlu0 %616 }
 0x60e   :  { %v626_v43 = vmul.f32 0.03125, %v617_v42 }
 0x60f   :  { %v619_v44 = vpop.xlane.xlu1 %618 }
 0x610   :  { %v627_v45 = vmul.f32 0.03125, %v619_v44  ;;  %v630_v47 = vmul.f32 %v626_v43, %v626_v43  ;;  %v636_v58 = vsub.f32 %v614_v27, %v626_v43  ;;  %v905_v27 = vld [vmem:[#allocation11 + $0x50] sm:$0xff] }
 0x611   :  { %v623_v46 = vpop.xlane.xlu0 %622  ;;  %v1309_v29 = vpack.c.bf16 %v906_v28, %v905_v27 }
 0x612   :  { %v628_v48 = vmul.f32 0.03125, %v623_v46  ;;  %v631_v50 = vmul.f32 %v627_v45, %v627_v45  ;;  %v637_v61 = vsub.f32 %v615_v30, %v627_v45  ;;  %v907_v30 = vld [vmem:[#allocation11 + $0x60] sm:$0xff]  ;;  %v821_v45 = vld [vmem:[%s1873_s8] sm:$0xff]  ;;  %s1579_s8 = smov [#allocation13]  }
 0x613   :  { %v625_v49 = vpop.xlane.xlu1 %624  ;;  %v1312_v33 = vpack.c.bf16 %v908_v32, %v907_v30  ;;  %s1011_s19 = sshll.u32 %s1579_s8, 4  ;;  %s1012_s19 = int_to_ptr.vmem [resolvable:$true] %s1011_s19 }
 0x614   :  { %v632_v51 = vsub.f32 %v628_v48, %v630_v47  ;;  %v629_v52 = vmul.f32 0.03125, %v625_v49  ;;  %v989_v48 = vlaneseq  ;;  %s1510_s0 = scalar_lea.vmem %s1012_s19, 128  ;;  %p1515_p7 = scmp.lt.s32.totalorder %s1012_s19, %s1012_s19 }
 0x615   :  { %p1511_p6 = scmp.ne.s32.totalorder %s1012_s19, %s1510_s0  ;;  %p1516_p8 = scmp.lt.s32.totalorder %s1510_s0, %s1510_s0 }
 0x616   :  { %v634_v53 = vmax.f32 %v632_v51, 0.0  ;;  %v633_v54 = vsub.f32 %v629_v52, %v631_v50  ;;  %v990_v49 = vand.u32 127, %v989_v48  ;;  %v1087_v50 = vld [vmem:[%s1875_s10] ss:$0 sm:$0xff] }
 0x617   :  { %p1517_p9 = por %p1516_p8, %p1515_p7 }
 0x618   :  { %v638_v55 = vadd.f32 1e-05, %v634_v53  ;;  %v635_v56 = vmax.f32 %v633_v54, 0.0  ;;  %vm991_vm2 = vcmp.lt.s32.totalorder %v990_v49, 4 }
 0x619   :  { %p1518_p10 = pnand %p1517_p9, %p1511_p6 }
 0x61a   :  { %1370 = vrsqrt.f32 %v638_v55  ;;  %v639_v57 = vadd.f32 1e-05, %v635_v56 }
 0x61c   :  { %1372 = vrsqrt.f32 %v639_v57 }
 0x624   :  { %v1371_v59 = vpop.eup %1370 }
 0x625   :  { %v642_v62 = vmul.f32 %v1371_v59, %v636_v58 }
 0x626   :  { %v1373_v63 = vpop.eup %1372 }
 0x627   :  { %v643_v1 = vmul.f32 %v1373_v63, %v637_v61  ;;  %v652_v2 = vmul.f32 %v1072_v60, %v642_v62 }
 0x629   :  { %v653_v4 = vmul.f32 %v1072_v60, %v643_v1  ;;  %v662_v5 = vadd.f32 %v1074_v3, %v652_v2 }
 0x62b   :  { %v663_v6 = vadd.f32 %v1074_v3, %v653_v4 }
 0x62d   :  { %v664_v7 = vpack.c.bf16 %v663_v6, %v662_v5 }
 0x62f   :  { %1239 = vmatmul.mubr.bf16.vlgmr.msra.gmra.mrb[4].mxu0 %v664_v7 }
 0x630   :  { %1287 = vmatprep.mubr.msk.f32.mxu0 %vm1577_vm0, %v1576_v0  ;;  %1295 = vmatpush3.bf16.msra.mxu0 %v1294_v17 }
 0x631   :  { %1296 = vmatprep.subr.bf16.mxu0 %v1578_v13 }
 0x634   :  { %1298 = vmatpush3.bf16.msra.mxu0 %v1297_v19 }
 0x635   :  { %1299 = vmatprep.subr.bf16.mxu0 %v1578_v13 }
 0x638   :  { %1301 = vmatpush3.bf16.msra.mxu0 %v1300_v22 }
 0x639   :  { %1302 = vmatprep.subr.bf16.mxu0 %v1578_v13 }
 0x702   :  { %v764_v8 = vpop.f32.mrb[4].mxu0 }
 0x703   :  { %v1240_v9 = vpop.f32.mrb[5].mxu0 }
 0x704   :  { %v767_v10 = vpop.f32.mrb[6].mxu0 }
 0x705   :  { %v771_v11 = vpack.c.bf16 %v767_v10, %v764_v8  ;;  %v1241_v12 = vpop.f32.mrb[7].mxu0 }
 0x707   :  { %1243 = vmatpush3.bf16.msra.mxu1 %v771_v11 }
 0x708   :  { %1290 = vmatprep.subr.bf16.mxu1 %v1578_v13 }
 0x70a   :  { %1245 = vmatmul.mubr.msk.bf16.vlgmr.msra.gmra.mrb[16].mxu1 %vm364_vm1, %v1778_v31  ;;  %v901_v31 = vld [vmem:[#allocation11 + $0x30] sm:$0xff] }
 0x70b   :  { %1252 = vmatprep.mubr.msk.f32.mxu1 %vm1577_vm0, %v1576_v0  ;;  %v1303_v0 = vpack.c.bf16 %v902_v23, %v901_v31 }
 0x70d   :  { %1304 = vmatpush3.bf16.msra.mxu0 %v1303_v0 }
 0x70e   :  { %1305 = vmatprep.subr.bf16.mxu0 %v1578_v13 }
 0x711   :  { %1307 = vmatpush3.bf16.msra.mxu0 %v1306_v26 }
 0x712   :  { %1308 = vmatprep.subr.bf16.mxu0 %v1578_v13 }
 0x715   :  { %1310 = vmatpush3.bf16.msra.mxu0 %v1309_v29 }
 0x716   :  { %1311 = vmatprep.subr.bf16.mxu0 %v1578_v13 }
 0x719   :  { %1313 = vmatpush3.bf16.msra.mxu0 %v1312_v33 }
 0x71a   :  { %1314 = vmatprep.subr.bf16.mxu0 %v1578_v13 }
 0x71d   :  { %1316 = vmatpush3.bf16.msra.mxu0 %v1315_v36 }
 0x7dd   :  { %v814_v38 = vpop.f32.mrb[16].mxu1 }
 0x7de   :  { %v1246_v39 = vpop.f32.mrb[17].mxu1  ;;  %v815_v41 = vadd.f32 %v1084_v37, %v814_v38 }
 0x7df   :  { %v817_v40 = vpop.f32.mrb[18].mxu1 }
 0x7e0   :  { %v818_v42 = vadd.f32 %v1084_v37, %v817_v40  ;;  %v1247_v43 = vpop.f32.mrb[19].mxu1 }
 0x7e2   :  { %v1291_v44 = vpack.c.bf16 %v818_v42, %v815_v41 }
 0x7e4   :  { %1292 = vmatpush3.bf16.msra.mxu1 %v1291_v44 }
 0x7e7   :  { %1253 = vmatmul.mubr.msk.f32.vlgmr.msra.gmra.mrb[20].mxu1 %vm364_vm1, %v821_v45 }
 0x8ba   :  { %v891_v46 = vpop.f32.mrb[20].mxu1 }
 0x8bb   :  { %1288 = vmatmul.mubr.f32.vlgmr.msra.gmra.mrb[8].mxu0 %v891_v46  ;;  %v1254_v47 = vpop.f32.mrb[21].mxu1 }
 0x98e   :  { %v984_v51 = vpop.f32.mrb[8].mxu0 }
 0x98f   :  { %v985_v52 = vadd.f32 %v1087_v50, %v984_v51  ;;  %v1289_v53 = vpop.f32.mrb[9].mxu0 }
 0x991   :  { %988 = vst [vmem:[#allocation13] sm:$0xff] %v985_v52  ;;  %v992_v54 = vsel %vm991_vm2, %v985_v52, -1e+30 }
 0x992   :  { %993 = vmax.xlane.f32.xlu0 %v992_v54 }
 0xa1f   :  { %v994_v55 = vpop.xlane.xlu0 %993 }
 0xa20   :  { %v995_v56 = vsub.f32 %v992_v54, %v994_v55 }
 0xa22   :  { %v996_v57 = vmul.f32 1.442695, %v995_v56 }
 0xa24   :  { %1374 = vpow2.f32 %v996_v57 }
 0xa2e   :  { %v1375_v58 = vpop.eup %1374 }
 0xa2f   :  { %998 = vadd.xlane.f32.xlu1 %v1375_v58 }
 0xa30   :  { %1521 = shalt.err (!%p1518_p10)
}
 0xa31   :  { %s1522_s20 = scalar_lea.hbm %s1876_s11, 128 }
 0xa32   :  { %p1523_p11 = scmp.ne.s32.totalorder %s1876_s11, %s1522_s20  ;;  %p1526_p12 = scmp.lt.u32.totalorder %s1522_s20, %s1876_s11 }
 0xa34   :  { %p1528_p13 = pnand %p1526_p12, %p1523_p11 }
 0xa36   :  { %1531 = shalt.err (!%p1528_p13)
}
 0xa37   :  { %1014 = dma.vmem_to_hbm [thread:$0]  %s1012_s19, 128, %s1876_s11, [#allocation4]  }
 0xa38   :  { %s1580_s25 = smov [#allocation14]  }
 0xa39   :  { %s1021_s26 = sshll.u32 %s1580_s25, 4  ;;  %s1022_s26 = int_to_ptr.vmem [resolvable:$true] %s1021_s26 }
 0xa3a   :  { %s1532_s3 = scalar_lea.vmem %s1022_s26, 128  ;;  %p1537_p1 = scmp.lt.s32.totalorder %s1022_s26, %s1022_s26 }
 0xa3b   :  { %p1533_p0 = scmp.ne.s32.totalorder %s1022_s26, %s1532_s3  ;;  %p1538_p2 = scmp.lt.s32.totalorder %s1532_s3, %s1532_s3 }
 0xa3d   :  { %p1539_p3 = por %p1538_p2, %p1537_p1 }
 0xa3f   :  { %p1540_p4 = pnand %p1539_p3, %p1533_p0 }
 0xabc   :  { %v999_v59 = vpop.xlane.xlu1 %998 }
 0xabd   :  { %1376 = vlog2.f32 %v999_v59 }
 0xac7   :  { %v1377_v60 = vpop.eup %1376 }
 0xac8   :  { %v1001_v61 = vmul.f32 0.6931472, %v1377_v60 }
 0xaca   :  { %v1002_v62 = vadd.f32 %v1001_v61, %v994_v55 }
 0xacc   :  { %v1003_v63 = vsub.f32 %v985_v52, %v1002_v62 }
 0xace   :  { %1004 = vst [vmem:[#allocation14] sm:$0xff] %v1003_v63 }
 0xacf   :  { %1543 = shalt.err (!%p1540_p4)
}
 0xad0   :  { %s1544_s11 = scalar_lea.hbm %s1877_s12, 128 }
 0xad1   :  { %p1545_p5 = scmp.ne.s32.totalorder %s1877_s12, %s1544_s11  ;;  %p1548_p6 = scmp.lt.u32.totalorder %s1544_s11, %s1877_s12 }
 0xad3   :  { %p1550_p7 = pnand %p1548_p6, %p1545_p5 }
 0xad5   :  { %1553 = shalt.err (!%p1550_p7)
}
 0xad6   :  { %1024 = dma.vmem_to_hbm [thread:$0]  %s1022_s26, 128, %s1877_s12, [#allocation15]  }
 0xad7   :  { %1562 = dma.done.wait [#allocation4], 128  }
 0xad8   :  { %1563 = vsyncadd [#allocation4], 4294967168 }
 0xad9   :  { %1564 = dma.done.wait [#allocation15], 128  }
 0xada   :  { %1565 = vsyncadd [#allocation15], 4294967168 }
 0xadb   :  { %1031 = vsyncpa [#allocation3], 1 }
 0xadc   :  { %1032 = vsyncpa [#allocation6], 1 }
 0xadd   :  { %1033 = vsyncpa [#allocation9], 1 }
 0xade   :  { %1034 = vsyncpa [#allocation12], 1 }
 0xadf   :  { %1035 = vsyncpa [#allocation4], 1 }
 0xae0   :  { %1036 = vsyncpa [#allocation15], 1 }

</bundles_post_ra>
